<compile_context>
chip_gen: v5e
topology: v5e:2x2
jax: 0.10.0
libtpu: 0.0.40
codegen_flags: <defaults>
</compile_context>

<pallas_src>
import jax
import jax.numpy as jnp
import numpy as np
from jax.experimental import pallas as pl
from jax.experimental.pallas import tpu as pltpu


# ----------------------------------------------------------------------------
# Kernel
# ----------------------------------------------------------------------------
def _casrel_head_kernel(embed_ref, mask_ref, gt_ref, w_ref, b_ref, out_ref):
    """One grid step processes TB batch elements.

    embed_ref : (TB, S, H)    bf16  encoder output tile
    mask_ref  : (TB, S, 1)    f32   attention mask (1 = keep, 0 = pad)
    gt_ref    : (TB, S, 1)    f32   0.5 * (subject_gt_start + subject_gt_end)
    w_ref     : (H, OUT)      bf16  packed [w_ss | w_se | w_os | w_oe], OUT = 2+2R
    b_ref     : (1, OUT)      f32   packed biases
    out_ref   : (TB, S, OUT)  bf16  packed sigmoid results (lane-dense slab)
    """
    TB, S, H = embed_ref.shape
    OUT = w_ref.shape[1]

    e = embed_ref[...]                                            # (TB,S,H) bf16

    # ---- fused classifier matmul (PRE-bias): one wide MXU op for all heads -
    logits_pre = jnp.dot(
        e.reshape(TB * S, H), w_ref[...],
        preferred_element_type=jnp.float32).reshape(TB, S, OUT)   # f32

    # ---- subject-repr correction folded into the packed logits -------------
    #   (gt_comb @ e) @ W == gt_comb @ (e @ W): contract gt_comb against the
    #   PRE-bias product (gt_comb sums to 1; post-bias would double the bias),
    #   then zero the two subject columns and broadcast over S.
    corr = jnp.sum(gt_ref[...] * logits_pre, axis=1)              # (TB, OUT) f32
    col = jax.lax.broadcasted_iota(jnp.int32, (1, OUT), 1)
    corr = jnp.where(col >= 2, corr, 0.0)                         # object cols only

    logits = logits_pre + b_ref[...] + corr[:, None, :]           # (TB, S, OUT)

    # ---- sigmoid + attention masking in f32 (EUP/VPU); packed bf16 store ---
    out_ref[...] = (jax.nn.sigmoid(logits) * mask_ref[...]).astype(out_ref.dtype)


# ----------------------------------------------------------------------------
# Tiling / VMEM budgeting (generation-aware)
# ----------------------------------------------------------------------------
def _pad(x, m):
    return ((x + m - 1) // m) * m


def _per_step_vmem_bytes(tb, S, H, OUT, out_itemsize):
    """Conservative per-grid-step VMEM footprint, counting (8/16,128) tile
    padding of every block plus the lane-padded f32 in-kernel intermediates."""
    S_bf = _pad(S, 16)            # bf16 sublane tile = 16 rows
    S_f32 = _pad(S, 8)            # f32 sublane tile = 8 rows
    H_l = _pad(H, 128)
    OUT_l = _pad(OUT, 128)

    embed = tb * S_bf * H_l * 2                   # (TB,S,H)   bf16
    mask = tb * S_f32 * 128 * 4                   # (TB,S,1)   f32, lane-padded
    gt = tb * S_f32 * 128 * 4                     # (TB,S,1)   f32, lane-padded
    out = tb * (S_bf if out_itemsize == 2 else S_f32) * OUT_l * out_itemsize
    w = _pad(H, 16) * OUT_l * 2                   # (H,OUT)    bf16 (resident)
    b = 8 * 128 * 4                               # (1,OUT)    f32

    dma = 2 * (embed + mask + gt + out + w + b)   # double-buffered blocks
    interm = 2 * tb * S_f32 * OUT_l * 4           # f32 logits / sigmoid vregs
    return dma + interm


def _vmem_config():
    """Generation-aware budgets: v5e/v6e have 128 MiB VMEM, v7x has 64 MiB per
    TensorCore (and two TCs, so prefer >= 4 grid steps when B permits)."""
    cap = 64 * 1024 * 1024  # conservative fallback (v7x-sized)
    try:
        cap = int(getattr(pltpu.get_tpu_info(), "vmem_capacity_bytes", cap))
    except Exception:
        pass
    if cap >= 100 * 1024 * 1024:          # v5e / v6e (128 MiB)
        return dict(step_budget=24 * 1024 * 1024,
                    vmem_limit=64 * 1024 * 1024,
                    min_steps=2)
    return dict(step_budget=16 * 1024 * 1024,     # v7x (64 MiB, 2 TCs)
                vmem_limit=32 * 1024 * 1024,
                min_steps=4)


def _choose_tb(B, S, H, OUT, *, step_budget_bytes, min_steps):
    """Largest divisor TB of B whose per-step footprint fits the budget while
    leaving at least min(min_steps, B) grid steps for megacore load balance."""
    steps_needed = min(min_steps, B)
    best = 1
    for tb in range(1, B + 1):
        if B % tb:
            continue
        if _per_step_vmem_bytes(tb, S, H, OUT, 2) > step_budget_bytes:
            continue
        if B // tb < steps_needed:
            continue
        best = tb
    return best


# ----------------------------------------------------------------------------
# Wrappers
# ----------------------------------------------------------------------------
def casrel_heads_pallas(bert_embed_bf16, attention_mask_f, gt_comb, params):
    B, S, H = bert_embed_bf16.shape
    R = params["w_os"].shape[1]
    OUT = 2 + 2 * R

    # ---- wrapper-side packing (tiny, done once per call) -------------------
    w_cat = jnp.concatenate(
        [params["w_ss"], params["w_se"], params["w_os"], params["w_oe"]],
        axis=1).astype(jnp.bfloat16)                            # (H, OUT)
    b_cat = jnp.concatenate(
        [params["b_ss"], params["b_se"], params["b_os"], params["b_oe"]],
        axis=1).astype(jnp.float32)                             # (1, OUT)

    mask3 = attention_mask_f[..., None].astype(jnp.float32)     # (B, S, 1)
    gt3 = gt_comb[..., None].astype(jnp.float32)                # (B, S, 1)

    cfg = _vmem_config()
    TB = _choose_tb(B, S, H, OUT,
                    step_budget_bytes=cfg["step_budget"],
                    min_steps=cfg["min_steps"])

    packed = pl.pallas_call(
        _casrel_head_kernel,
        out_shape=jax.ShapeDtypeStruct((B, S, OUT), jnp.bfloat16),
        grid_spec=pltpu.PrefetchScalarGridSpec(
            num_scalar_prefetch=0,
            grid=(B // TB,),
            in_specs=[
                pl.BlockSpec((TB, S, H), lambda b: (b, 0, 0)),   # embed (bf16)
                pl.BlockSpec((TB, S, 1), lambda b: (b, 0, 0)),   # mask
                pl.BlockSpec((TB, S, 1), lambda b: (b, 0, 0)),   # gt_comb
                pl.BlockSpec((H, OUT), lambda b: (0, 0)),        # packed W
                pl.BlockSpec((1, OUT), lambda b: (0, 0)),        # packed b
            ],
            out_specs=pl.BlockSpec((TB, S, OUT), lambda b: (b, 0, 0)),
        ),
        compiler_params=pltpu.CompilerParams(
            dimension_semantics=("parallel",),
            vmem_limit_bytes=cfg["vmem_limit"],
        ),
    )(bert_embed_bf16, mask3, gt3, w_cat, b_cat)

    # split the packed slab back into the four result tensors (tiny slices)
    ss = packed[..., 0:1]
    se = packed[..., 1:2]
    osr = packed[..., 2:2 + R]
    oer = packed[..., 2 + R:2 + 2 * R]
    return ss, se, osr, oer


def casrel_forward_train(input_ids, token_type_ids, attention_mask,
                         subject_gt_start, subject_gt_end, params):
    """Training-branch forward of CASREL. Glue (synthetic BERT, ro_mask
    broadcast, output splitting) in plain JAX; the CASREL head hot path
    (fused packed classifiers, folded subject-repr correction, sigmoid,
    masking) in Pallas."""
    # --- synthetic stand-in for self.bert(...)  (glue) ---
    # TODO(synk): pretrained BERT encoder not re-implemented in Pallas.
    tok_emb = params["tok_emb"][input_ids]                # (B, S, H)
    typ_emb = params["typ_emb"][token_type_ids]           # (B, S, H)
    # Producer emits bf16 directly (cast fuses into this producer under jit),
    # so there is no standalone f32->bf16 HBM round trip before the kernel.
    output = jnp.tanh(tok_emb + typ_emb).astype(jnp.bfloat16)   # (B, S, H) bf16

    amask_f = attention_mask.astype(jnp.float32)          # (B, S)
    gt_comb = 0.5 * (subject_gt_start.astype(jnp.float32)
                     + subject_gt_end.astype(jnp.float32))  # (B, S), sums to 1

    ss, se, osr, oer = casrel_heads_pallas(output, amask_f, gt_comb, params)

    R = params["w_os"].shape[1]
    ro_attention_mask = jnp.broadcast_to(
        amask_f[..., None], (amask_f.shape[0], amask_f.shape[1], R))
    return {
        "subject_start_result": ss,          # (B, S, 1)  bf16 probabilities
        "subject_end_result": se,            # (B, S, 1)
        "object_start_result": osr,          # (B, S, R)
        "object_end_result": oer,            # (B, S, R)
        "subject_mask": attention_mask,      # (B, S)
        "ro_mask": ro_attention_mask,        # (B, S, R)
    }, output


# ----------------------------------------------------------------------------
# Reference + test harness
# ----------------------------------------------------------------------------
def _reference(output_f32, attention_mask, gts, gte, params):
    """Pure-JAX f32 reference of the kernel math (for correctness check)."""
    amask = attention_mask.astype(jnp.float32)[..., None]                  # (B,S,1)
    ss = jax.nn.sigmoid(output_f32 @ params["w_ss"] + params["b_ss"]) * amask
    se = jax.nn.sigmoid(output_f32 @ params["w_se"] + params["b_se"]) * amask
    start_repr = jnp.einsum("bs,bsh->bh", gts, output_f32)[:, None, :]
    end_repr = jnp.einsum("bs,bsh->bh", gte, output_f32)[:, None, :]
    embed2 = output_f32 + (start_repr + end_repr) * 0.5
    osr = jax.nn.sigmoid(embed2 @ params["w_os"] + params["b_os"]) * amask
    oer = jax.nn.sigmoid(embed2 @ params["w_oe"] + params["b_oe"]) * amask
    return ss, se, osr, oer


def _xavier_uniform(key, fan_in, fan_out):
    bound = float(np.sqrt(6.0 / (fan_in + fan_out)))
    # stored as (fan_in, fan_out) i.e. transposed relative to torch Linear.weight
    return jax.random.uniform(key, (fan_in, fan_out), jnp.float32, -bound, bound)


if __name__ == "__main__":
    B, S, H, R = 2, 8, 32, 4      # batch, seq_l, hidden, relation_cnt
    VOCAB = 64

    key = jax.random.PRNGKey(0)
    k_tok, k_typ, k_ss, k_se, k_os, k_oe, k_ids = jax.random.split(key, 7)

    params = {
        # synthetic "BERT" embedding tables (stand-in for the PLM)
        "tok_emb": 0.1 * jax.random.normal(k_tok, (VOCAB, H), jnp.float32),
        "typ_emb": 0.1 * jax.random.normal(k_typ, (2, H), jnp.float32),
        # CASREL classifier heads (xavier_uniform weights, zero biases)
        "w_ss": _xavier_uniform(k_ss, H, 1), "b_ss": jnp.zeros((1, 1), jnp.float32),
        "w_se": _xavier_uniform(k_se, H, 1), "b_se": jnp.zeros((1, 1), jnp.float32),
        "w_os": _xavier_uniform(k_os, H, R), "b_os": jnp.zeros((1, R), jnp.float32),
        "w_oe": _xavier_uniform(k_oe, H, R), "b_oe": jnp.zeros((1, R), jnp.float32),
    }

    input_ids = jax.random.randint(k_ids, (B, S), 0, VOCAB, jnp.int32)
    token_type_ids = jnp.zeros((B, S), jnp.int32)
    attention_mask = jnp.array([[1, 1, 1, 1, 1, 1, 0, 0],
                                [1, 1, 1, 1, 0, 0, 0, 0]], jnp.int32)
    subject_gt_start = jnp.zeros((B, S), jnp.float32).at[0, 1].set(1.0).at[1, 0].set(1.0)
    subject_gt_end = jnp.zeros((B, S), jnp.float32).at[0, 3].set(1.0).at[1, 2].set(1.0)

    fwd = jax.jit(casrel_forward_train)
    results, bert_out = fwd(input_ids, token_type_ids, attention_mask,
                            subject_gt_start, subject_gt_end, params)
    jax.block_until_ready(results)

    # correctness check against a pure-f32 JAX reference of the same math
    # (tolerance loosened: kernel uses bf16 MXU operands and a bf16 output)
    ref_ss, ref_se, ref_os, ref_oe = _reference(
        bert_out.astype(jnp.float32), attention_mask,
        subject_gt_start, subject_gt_end, params)
    np.testing.assert_allclose(
        results["subject_start_result"].astype(jnp.float32), ref_ss, rtol=2e-2, atol=2e-2)
    np.testing.assert_allclose(
        results["subject_end_result"].astype(jnp.float32), ref_se, rtol=2e-2, atol=2e-2)
    np.testing.assert_allclose(
        results["object_start_result"].astype(jnp.float32), ref_os, rtol=2e-2, atol=2e-2)
    np.testing.assert_allclose(
        results["object_end_result"].astype(jnp.float32), ref_oe, rtol=2e-2, atol=2e-2)

    print("KERNEL_OK")
</pallas_src>

<mosaic_0001>
module attributes {stable_mosaic.version = 11 : i64} {
  func.func @_casrel_head_kernel(%arg0: i32, %arg1: memref<1x8x32xbf16, #tpu.memory_space<vmem>>, %arg2: memref<1x8x1xf32, #tpu.memory_space<vmem>>, %arg3: memref<1x8x1xf32, #tpu.memory_space<vmem>>, %arg4: memref<32x10xbf16, #tpu.memory_space<vmem>>, %arg5: memref<1x10xf32, #tpu.memory_space<vmem>>, %arg6: memref<1x8x10xbf16, #tpu.memory_space<vmem>>) attributes {dimension_semantics = [#tpu.dimension_semantics<parallel>], iteration_bounds = array<i64: 2>, scalar_prefetch = 0 : i64, scratch_operands = 0 : i64, tpu.core_type = #tpu.core_type<tc>, window_params = [{transform_indices = @transform_0, window_bounds = array<i64: 1, 8, 32>}, {transform_indices = @transform_1, window_bounds = array<i64: 1, 8, 1>}, {transform_indices = @transform_2, window_bounds = array<i64: 1, 8, 1>}, {pipeline_mode = #tpu.pipeline_mode<synchronous>, transform_indices = @transform_3, window_bounds = array<i64: 32, 10>}, {pipeline_mode = #tpu.pipeline_mode<synchronous>, transform_indices = @transform_4, window_bounds = array<i64: 1, 10>}, {transform_indices = @transform_5, window_bounds = array<i64: 1, 8, 10>}]} {
    %c0 = arith.constant 0 : index
    %c0_0 = arith.constant 0 : index
    %c0_1 = arith.constant 0 : index
    %0 = vector.load %arg1[%c0, %c0_0, %c0_1] : memref<1x8x32xbf16, #tpu.memory_space<vmem>>, vector<1x8x32xbf16>
    %1 = vector.shape_cast %0 : vector<1x8x32xbf16> to vector<8x32xbf16>
    %c0_2 = arith.constant 0 : index
    %c0_3 = arith.constant 0 : index
    %2 = vector.load %arg4[%c0_2, %c0_3] : memref<32x10xbf16, #tpu.memory_space<vmem>>, vector<32x10xbf16>
    %cst = arith.constant dense<0.000000e+00> : vector<8x10xf32>
    %3 = tpu.matmul %1, %2, %cst {dimension_numbers = #tpu.dot_dimension_numbers<[1], [0], [0], [1], [0, 0, 1, 1], [], []>} : vector<8x32xbf16>, vector<32x10xbf16>, vector<8x10xf32> -> vector<8x10xf32>
    %4 = vector.shape_cast %3 : vector<8x10xf32> to vector<1x8x10xf32>
    %c0_4 = arith.constant 0 : index
    %c0_5 = arith.constant 0 : index
    %c0_6 = arith.constant 0 : index
    %5 = vector.load %arg3[%c0_4, %c0_5, %c0_6] : memref<1x8x1xf32, #tpu.memory_space<vmem>>, vector<1x8x1xf32>
    %6 = vector.broadcast %5 : vector<1x8x1xf32> to vector<1x8x10xf32>
    %7 = arith.mulf %6, %4 : vector<1x8x10xf32>
    %cst_7 = arith.constant dense<0.000000e+00> : vector<1x10xf32>
    %8 = vector.multi_reduction <add>, %7, %cst_7 [1] : vector<1x8x10xf32> to vector<1x10xf32>
    %9 = tpu.iota {dimensions = array<i32: 1>} : vector<1x10xi32>
    %c2_i32 = arith.constant 2 : i32
    %10 = vector.broadcast %c2_i32 : i32 to vector<1x10xi32>
    %11 = arith.cmpi sge, %9, %10 : vector<1x10xi32>
    %cst_8 = arith.constant 0.000000e+00 : f32
    %12 = vector.broadcast %cst_8 : f32 to vector<1x10xf32>
    %13 = arith.select %11, %8, %12 : vector<1x10xi1>, vector<1x10xf32>
    %c0_9 = arith.constant 0 : index
    %c0_10 = arith.constant 0 : index
    %14 = vector.load %arg5[%c0_9, %c0_10] : memref<1x10xf32, #tpu.memory_space<vmem>>, vector<1x10xf32>
    %15 = vector.shape_cast %14 : vector<1x10xf32> to vector<1x1x10xf32>
    %16 = vector.broadcast %15 : vector<1x1x10xf32> to vector<1x8x10xf32>
    %17 = arith.addf %4, %16 : vector<1x8x10xf32>
    %18 = vector.shape_cast %13 : vector<1x10xf32> to vector<1x1x10xf32>
    %19 = vector.broadcast %18 : vector<1x1x10xf32> to vector<1x8x10xf32>
    %20 = arith.addf %17, %19 : vector<1x8x10xf32>
    %21 = arith.negf %20 : vector<1x8x10xf32>
    %22 = math.exp %21 : vector<1x8x10xf32>
    %cst_11 = arith.constant 1.000000e+00 : f32
    %23 = vector.broadcast %cst_11 : f32 to vector<1x8x10xf32>
    %24 = arith.addf %23, %22 : vector<1x8x10xf32>
    %25 = arith.divf %23, %24 : vector<1x8x10xf32>
    %c0_12 = arith.constant 0 : index
    %c0_13 = arith.constant 0 : index
    %c0_14 = arith.constant 0 : index
    %26 = vector.load %arg2[%c0_12, %c0_13, %c0_14] : memref<1x8x1xf32, #tpu.memory_space<vmem>>, vector<1x8x1xf32>
    %27 = vector.broadcast %26 : vector<1x8x1xf32> to vector<1x8x10xf32>
    %28 = arith.mulf %25, %27 : vector<1x8x10xf32>
    %29 = arith.truncf %28 : vector<1x8x10xf32> to vector<1x8x10xbf16>
    %c0_15 = arith.constant 0 : index
    %c0_16 = arith.constant 0 : index
    %c0_17 = arith.constant 0 : index
    %30 = vector.load %arg6[%c0_15, %c0_16, %c0_17] : memref<1x8x10xbf16, #tpu.memory_space<vmem>>, vector<1x8x10xbf16>
    tpu.vector_store %arg6[%c0_15, %c0_16, %c0_17], %29 {strides = array<i32>} : memref<1x8x10xbf16, #tpu.memory_space<vmem>>, vector<1x8x10xbf16>,
    return
  }
  func.func @transform_0(%arg0: i32) -> (i32, i32, i32) {
    %c0_i32 = arith.constant 0 : i32
    %c0_i32_0 = arith.constant 0 : i32
    %c0_i32_1 = arith.constant 0 : i32
    return %arg0, %c0_i32, %c0_i32_0 : i32, i32, i32
  }
  func.func @transform_1(%arg0: i32) -> (i32, i32, i32) {
    %c0_i32 = arith.constant 0 : i32
    %c0_i32_0 = arith.constant 0 : i32
    %c0_i32_1 = arith.constant 0 : i32
    return %arg0, %c0_i32, %c0_i32_0 : i32, i32, i32
  }
  func.func @transform_2(%arg0: i32) -> (i32, i32, i32) {
    %c0_i32 = arith.constant 0 : i32
    %c0_i32_0 = arith.constant 0 : i32
    %c0_i32_1 = arith.constant 0 : i32
    return %arg0, %c0_i32, %c0_i32_0 : i32, i32, i32
  }
  func.func @transform_3(%arg0: i32) -> (i32, i32) {
    %c0_i32 = arith.constant 0 : i32
    %c0_i32_0 = arith.constant 0 : i32
    %c0_i32_1 = arith.constant 0 : i32
    return %c0_i32, %c0_i32_0 : i32, i32
  }
  func.func @transform_4(%arg0: i32) -> (i32, i32) {
    %c0_i32 = arith.constant 0 : i32
    %c0_i32_0 = arith.constant 0 : i32
    %c0_i32_1 = arith.constant 0 : i32
    return %c0_i32, %c0_i32_0 : i32, i32
  }
  func.func @transform_5(%arg0: i32) -> (i32, i32, i32) {
    %c0_i32 = arith.constant 0 : i32
    %c0_i32_0 = arith.constant 0 : i32
    %c0_i32_1 = arith.constant 0 : i32
    return %arg0, %c0_i32, %c0_i32_0 : i32, i32, i32
  }
}

</mosaic_0001>

<bundles_post_ra>
// kernel: casrel_forward_train.1
= control target key start
LH: loop header
LB: loop body
LE: loop exit
PB: predicated region body
PF: predicated region fallthrough
CT: control target
= control target key end

     0   :  { %s497_s18 = smov 0   ;;  %s537_s0 = inlined_call_operand.vmem [shape: bf16[2,8,32], index: 0, kind: input, shape index: {}]   ;;  %s538_s1 = inlined_call_operand.vmem [shape: f32[2,8,1], index: 1, kind: input, shape index: {}]   ;;  %s539_s2 = inlined_call_operand.vmem [shape: f32[2,8,1], index: 2, kind: input, shape index: {}]   ;;  %s540_s3 = inlined_call_operand.vmem [shape: bf16[32,10], index: 3, kind: input, shape index: {}]   ;;  %s541_s4 = inlined_call_operand.vmem [shape: f32[1,10], index: 4, kind: input, shape index: {}]   ;;  %s542_s5 = inlined_call_operand.vmem [shape: bf16[2,8,10], index: 5, kind: output, shape index: {}]  }
   0x1 LB: > { %s420_s19 = sadd.s32 4294967295, %s464_s18   ;;  %p424_p0 = scmp.ge.s32.totalorder %s464_s18, 1  ;;  %s464_s18 = sphi %s497_s18, %s15_s18  }
   0x2   : > { %p204_p1 = scmp.lt.s32.totalorder %s464_s18, 3 }
   0x4   : > { %p205_p2 = pnand %p424_p0, %p204_p1 }
   0x5   : > { %p238_p3 = scmp.lt.s32.totalorder (!%p205_p2), %s420_s19, 1 }
   0x6   : > { %208 = sbr.rel (%p205_p2) target bundleno = 196 (0xc4), region = 40 }
   0xb   : > { %v442_v0 = vld [vmem:[%s540_s3 + $0x8] sm:$0xff]  ;;  %v466_v1 = vmov 0   ;;  %v441_v2 = vld [vmem:[%s540_s3] sm:$0xff]  ;;  %s544_s19 = smov (!%p238_p3, %s420_s19), 1  ;;  %vm272_vm0 = vcmask 261120   ;;  %vm296_vm1 = vcmask 80896   ;;  %v304_v11 = vlaneseq }
   0xc   : > { %452 = vset.pattern.permute.xlu0 %v466_v1  ;;  %282 = vmatpush.bf16.msra.mxu0 %v442_v0  ;;  %s425_s24 = sshll.u32 %s544_s19, 2  ;;  %s426_s25 = sshll.u32 %s544_s19, 3  ;;  %v453_v17 = vld [vmem:[%s541_s4] ss:$0 sm:$0xff]  ;;  %vm341_vm7 = vcmask 76800  }
   0xd   : > { %s241_s28 = scalar_lea.vmem %s537_s0, %s425_s24  ;;  %s249_s6 = scalar_lea.vmem %s539_s2, %s426_s25  ;;  %v305_v15 = vand.u32 127, %v304_v11 }
   0xe   : > { %v255_v3 = vld [vmem:[%s241_s28] sm:$0xf]  ;;  %s245_s9 = scalar_lea.vmem %s538_s1, %s426_s25  ;;  %s253_s14 = scalar_lea.vmem %s542_s5, %s425_s24 }
   0xf   : > { %v289_v4 = vld [vmem:[%s249_s6] sm:$0xff]  ;;  %vm306_vm2 = vcmp.ge.s32.totalorder %v305_v15, 2 }
  0x10   : > { %283 = vmatpush.bf16.msra.mxu0 %v441_v2  ;;  %292 = vperm.xlu0 %452, %v289_v4   ;;  %v333_v5 = vld [vmem:[%s245_s9] sm:$0xff] }
  0x13   : > { %437 = vmatmul.msk.bf16.vlgmr.msra.gmra.mxu0 %vm272_vm0, %v255_v3 }
  0x18   : > { %336 = vperm.xlu0 %452, %v333_v5  }
  0x82   : > { %v293_v6 = vpop.permute.xlu0 %292 }
  0x8a   : > { %v337_v35 = vpop.permute.xlu0 %336 }
  0x90   : > { %v285_v7 = vpop.f32.mrf.mxu0 }
  0x91   : > { %v295_v8 = vmul.f32 %v293_v6, %v285_v7  ;;  %v312_v20 = vadd.f32 %v453_v17, %v285_v7 }
  0x93   : > { %v297_v9 = vsel %vm296_vm1, %v295_v8, 0.0 }
  0x94   : > { %v298_v10 = vrot.slane %v297_v9, 4 }
  0x96   : > { %v299_v12 = vadd.f32 %v298_v10, %v297_v9 }
  0x98   : > { %v300_v13 = vrot.slane %v299_v12, 2  ;;  %v287_v14 = vpop.f32.mrf.mxu0 }
  0x9a   : > { %v301_v16 = vadd.f32 %v300_v13, %v299_v12 }
  0x9c   : > { %v302_v18 = vrot.slane %v301_v16, 1 }
  0x9e   : > { %v303_v19 = vadd.f32 %v302_v18, %v301_v16 }
  0xa0   : > { %v307_v21 = vsel %vm306_vm2, %v303_v19, 0.0 }
  0xa1   : > { %v313_v22 = vadd.f32 %v312_v20, %v307_v21 }
  0xa3   : > { %v438_v23 = vmul.f32 -1.442695, %v313_v22 }
  0xa5   : > { %454 = vpow2.f32 %v438_v23 }
  0xab   : > { %v455_v24 = vpop.eup %454 }
  0xac   : > { %v317_v25 = vadd.f32 1.0, %v455_v24 }
  0xae   : > { %456 = vrcp.f32 %v317_v25  ;;  %v329_v29 = vand.u32 2147483648, %v317_v25  ;;  %v327_v31 = vand.u32 2147483647, %v317_v25  ;;  %vm323_vm4 = vweird.f32 %v317_v25 }
  0xb0   : > { %v330_v33 = vor.u32 1.1754944e-38, %v329_v29  ;;  %vm328_vm6 = vcmp.eq.f32.partialorder %v327_v31, 8.507059e+37 }
  0xb4   : > { %v457_v26 = vpop.eup %456 }
  0xb5   : > { %v319_v27 = vmul.f32 %v457_v26, %v317_v25  ;;  %vm324_vm3 = vweird.f32 %v457_v26 }
  0xb6   : > { %vm325_vm5 = vmor %vm323_vm4, %vm324_vm3 }
  0xb7   : > { %v320_v28 = vsub.f32 1.0, %v319_v27 }
  0xb9   : > { %v321_v30 = vmul.f32 %v457_v26, %v320_v28 }
  0xbb   : > { %v322_v32 = vadd.f32 %v457_v26, %v321_v30 }
  0xbd   : > { %v326_v34 = vsel %vm325_vm5, %v457_v26, %v322_v32 }
  0xbe   : > { %v331_v36 = vsel %vm328_vm6, %v330_v33, %v326_v34 }
  0xbf   : > { %v339_v37 = vmul.f32 %v337_v35, %v331_v36 }
  0xc1   : > { %v340_v38 = vpack.c.bf16 %v339_v37, %v339_v37 }
  0xc3   : > { %342 = vst.msk [vmem:[%s253_s14] sm:$0xf] %vm341_vm7, %v340_v38 }
  0xc4 PF: > { %s15_s18 = sadd.s32 1, %s464_s18  }
  0xc5   : > { %p12_p4 = scmp.ge.s32.totalorder %s15_s18, 4  }
  0xc7   :  { %14 = sbr.rel (!%p12_p4) target bundleno = 1 (0x1), region = 76 }

</bundles_post_ra>
